<compile_context>
chip_gen: v5e
topology: v5e:2x2
jax: 0.10.0
libtpu: 0.0.40
codegen_flags: <defaults>
</compile_context>

<pallas_src>
import functools

import jax
import jax.numpy as jnp
from jax import lax
from jax.experimental import pallas as pl
from jax.experimental.pallas import tpu as pltpu

LANES = 128
ROW_TILE = 4096            # rows per grid step: 4096 x 128 x 4B = 2 MiB / block
ROW_ALIGN = 16             # keep block rows (16,128)-tileable for any dtype
VMEM_LIMIT = 32 * 1024 * 1024


def _bce_dice_kernel(x_ref, t_ref, bce_ref, prod_ref, denom_ref,
                     *, valid_rows, weight):
    i = pl.program_id(0)
    nsteps = pl.num_programs(0)

    x = x_ref[...].astype(jnp.float32)
    t = t_ref[...].astype(jnp.float32)
    block_rows, lanes = x.shape
    nr = block_rows // 8          # block_rows is always a multiple of 8

    # Shared transcendentals: e = exp(-|x|) feeds both the numerically-stable
    # softplus and the sigmoid (2 transcendentals per element total).
    e = jnp.exp(-jnp.abs(x))
    softplus_neg_x = jnp.maximum(-x, 0.0) + jnp.log1p(e)

    # BCE-with-logits with pos_weight = weight:
    #   l = (1 - t) * x + (1 + (w - 1) * t) * softplus(-x)
    if weight == 1.0:            # static specialization (compile-time float)
        bce = (1.0 - t) * x + softplus_neg_x
    else:
        bce = (1.0 - t) * x + (1.0 + (weight - 1.0) * t) * softplus_neg_x

    # sigmoid(x) = (x >= 0 ? 1 : e) / (1 + e)   with e = exp(-|x|)
    pred = jnp.where(x >= 0.0, 1.0, e) / (1.0 + e)

    def emit(b, p, tt):
        # Reduce this block to (8,128) partial sums via tile-aligned reshape +
        # cross-vreg VALU adds (no XLU, no accumulator read-modify-write).
        def red8(v):
            return v.reshape(nr, 8, lanes).sum(axis=0)
        bce_ref[...] = red8(b)
        prod_ref[...] = red8(p * tt)
        denom_ref[...] = red8(p + tt)     # dice only needs pred_sum + truth_sum

    needs_mask = (valid_rows % block_rows) != 0   # static python bool
    if not needs_mask:
        emit(bce, pred, t)
    else:
        @pl.when(i != nsteps - 1)
        def _():
            emit(bce, pred, t)

        @pl.when(i == nsteps - 1)
        def _():
            # Only the final (ragged) block pays for the iota/mask.  Row-based
            # validity (no flat index) -> no int32 overflow concern.  Use
            # jnp.where so garbage/NaN in the padded tail is cleanly zeroed.
            row = lax.broadcasted_iota(jnp.int32, x.shape, 0) + i * block_rows
            valid = row < valid_rows
            zero = jnp.zeros_like(x)
            emit(jnp.where(valid, bce, zero),
                 jnp.where(valid, pred, zero),
                 jnp.where(valid, t, zero))


def bce_dice_loss(logits, target, *, gamma=0.5, weight=1.0):
    """BCEDiceLoss forward. logits/target: same shape (e.g. NCHW)."""
    assert logits.shape == target.shape
    total = int(logits.size)
    gamma = float(gamma)
    weight = float(weight)

    x = logits.reshape(-1)
    t = target.reshape(-1)

    rows = total // LANES
    main = rows * LANES
    rem = total - main

    bce_sum = jnp.float32(0.0)
    prod_sum = jnp.float32(0.0)
    denom_sum = jnp.float32(0.0)

    if rows > 0:
        # 128-aligned prefix only; the tail is handled below in plain jnp.
        # TODO(synk): when total % 128 != 0 this prefix slice costs one HBM
        # copy (rare for conv feature maps); exact otherwise.
        x2 = x[:main].reshape(rows, LANES)
        t2 = t[:main].reshape(rows, LANES)

        block_rows = min(ROW_TILE, -(-rows // ROW_ALIGN) * ROW_ALIGN)
        num_tiles = -(-rows // block_rows)

        kernel = functools.partial(
            _bce_dice_kernel, valid_rows=rows, weight=weight)

        out_blk = jax.ShapeDtypeStruct((num_tiles, 8, LANES), jnp.float32)
        out_bce, out_prod, out_denom = pl.pallas_call(
            kernel,
            out_shape=(out_blk, out_blk, out_blk),
            grid_spec=pltpu.PrefetchScalarGridSpec(
                num_scalar_prefetch=0,
                grid=(num_tiles,),
                in_specs=[
                    pl.BlockSpec((block_rows, LANES), lambda i: (i, 0)),
                    pl.BlockSpec((block_rows, LANES), lambda i: (i, 0)),
                ],
                out_specs=[
                    pl.BlockSpec((None, 8, LANES), lambda i: (i, 0, 0)),
                    pl.BlockSpec((None, 8, LANES), lambda i: (i, 0, 0)),
                    pl.BlockSpec((None, 8, LANES), lambda i: (i, 0, 0)),
                ],
            ),
            compiler_params=pltpu.CompilerParams(
                dimension_semantics=("parallel",),
                vmem_limit_bytes=VMEM_LIMIT),
        )(x2, t2)

        bce_sum = jnp.sum(out_bce)
        prod_sum = jnp.sum(out_prod)
        denom_sum = jnp.sum(out_denom)

    if rem:
        # <=127-element tail, negligible: plain jnp in the wrapper.
        xt = x[main:].astype(jnp.float32)
        tt = t[main:].astype(jnp.float32)
        e = jnp.exp(-jnp.abs(xt))
        sp = jnp.maximum(-xt, 0.0) + jnp.log1p(e)
        if weight == 1.0:
            bce_t = (1.0 - tt) * xt + sp
        else:
            bce_t = (1.0 - tt) * xt + (1.0 + (weight - 1.0) * tt) * sp
        pred_t = jnp.where(xt >= 0.0, 1.0, e) / (1.0 + e)
        bce_sum = bce_sum + jnp.sum(bce_t)
        prod_sum = prod_sum + jnp.sum(pred_t * tt)
        denom_sum = denom_sum + jnp.sum(pred_t) + jnp.sum(tt)

    smooth = 1.0
    bce_mean = bce_sum / jnp.float32(total)
    dice_coef = 2.0 * (prod_sum + smooth) / (denom_sum + smooth)
    return (1.0 - gamma) * bce_mean + (1.0 - dice_coef) * gamma


def _reference(logits, target, gamma=0.5, weight=1.0):
    x = logits.astype(jnp.float32)
    t = target.astype(jnp.float32)
    sp = jnp.maximum(-x, 0.0) + jnp.log1p(jnp.exp(-jnp.abs(x)))
    bce = jnp.mean((1.0 - t) * x + (1.0 + (weight - 1.0) * t) * sp)
    pred = jax.nn.sigmoid(x).reshape(-1)
    truth = t.reshape(-1)
    smooth = 1.0
    dice = 2.0 * (jnp.sum(pred * truth) + smooth) / (
        jnp.sum(pred) + jnp.sum(truth) + smooth)
    return (1.0 - gamma) * bce + (1.0 - dice) * gamma


if __name__ == "__main__":
    key = jax.random.PRNGKey(0)
    k1, k2 = jax.random.split(key)
    # NCHW, as the PyTorch module would receive from a conv net.
    x = jax.random.normal(k1, (2, 4, 16, 16), dtype=jnp.float32)
    t = (jax.random.uniform(k2, (2, 4, 16, 16)) > 0.5).astype(jnp.float32)

    loss = bce_dice_loss(x, t, gamma=0.5, weight=1.0)
    jax.block_until_ready(loss)

    ref = _reference(x, t, gamma=0.5, weight=1.0)
    assert jnp.allclose(loss, ref, rtol=1e-5, atol=1e-5), (loss, ref)
    print("KERNEL_OK")
</pallas_src>

<mosaic_0001>
module attributes {stable_mosaic.version = 11 : i64} {
  func.func @_bce_dice_kernel(%arg0: i32, %arg1: memref<16x128xf32, #tpu.memory_space<vmem>>, %arg2: memref<16x128xf32, #tpu.memory_space<vmem>>, %arg3: memref<1x8x128xf32, #tpu.memory_space<vmem>>, %arg4: memref<1x8x128xf32, #tpu.memory_space<vmem>>, %arg5: memref<1x8x128xf32, #tpu.memory_space<vmem>>) attributes {dimension_semantics = [#tpu.dimension_semantics<parallel>], iteration_bounds = array<i64: 1>, scalar_prefetch = 0 : i64, scratch_operands = 0 : i64, tpu.core_type = #tpu.core_type<tc>, window_params = [{transform_indices = @transform_0, window_bounds = array<i64: 16, 128>}, {transform_indices = @transform_1, window_bounds = array<i64: 16, 128>}, {transform_indices = @transform_2, window_bounds = array<i64: 1, 8, 128>}, {transform_indices = @transform_3, window_bounds = array<i64: 1, 8, 128>}, {transform_indices = @transform_4, window_bounds = array<i64: 1, 8, 128>}]} {
    %c0 = arith.constant 0 : index
    %c0_0 = arith.constant 0 : index
    %0 = vector.load %arg1[%c0, %c0_0] : memref<16x128xf32, #tpu.memory_space<vmem>>, vector<16x128xf32>
    %c0_1 = arith.constant 0 : index
    %c0_2 = arith.constant 0 : index
    %1 = vector.load %arg2[%c0_1, %c0_2] : memref<16x128xf32, #tpu.memory_space<vmem>>, vector<16x128xf32>
    %2 = math.absf %0 : vector<16x128xf32>
    %cst = arith.constant 0.000000e+00 : f32
    %3 = vector.broadcast %cst : f32 to vector<16x128xf32>
    %4 = arith.subf %3, %2 : vector<16x128xf32>
    %5 = math.exp %4 : vector<16x128xf32>
    %cst_3 = arith.constant 0.000000e+00 : f32
    %6 = vector.broadcast %cst_3 : f32 to vector<16x128xf32>
    %7 = arith.subf %6, %0 : vector<16x128xf32>
    %cst_4 = arith.constant 0.000000e+00 : f32
    %8 = vector.broadcast %cst_4 : f32 to vector<16x128xf32>
    %9 = arith.maximumf %7, %8 : vector<16x128xf32>
    %10 = math.log1p %5 : vector<16x128xf32>
    %11 = arith.addf %9, %10 : vector<16x128xf32>
    %cst_5 = arith.constant 1.000000e+00 : f32
    %12 = vector.broadcast %cst_5 : f32 to vector<16x128xf32>
    %13 = arith.subf %12, %1 : vector<16x128xf32>
    %14 = arith.mulf %13, %0 : vector<16x128xf32>
    %15 = arith.addf %14, %11 : vector<16x128xf32>
    %cst_6 = arith.constant 0.000000e+00 : f32
    %16 = vector.broadcast %cst_6 : f32 to vector<16x128xf32>
    %17 = arith.cmpf oge, %0, %16 : vector<16x128xf32>
    %cst_7 = arith.constant 1.000000e+00 : f32
    %18 = vector.broadcast %cst_7 : f32 to vector<16x128xf32>
    %19 = arith.select %17, %18, %5 : vector<16x128xi1>, vector<16x128xf32>
    %cst_8 = arith.constant 1.000000e+00 : f32
    %20 = vector.broadcast %cst_8 : f32 to vector<16x128xf32>
    %21 = arith.addf %20, %5 : vector<16x128xf32>
    %22 = arith.divf %19, %21 : vector<16x128xf32>
    %23 = vector.shape_cast %15 : vector<16x128xf32> to vector<2x8x128xf32>
    %cst_9 = arith.constant dense<0.000000e+00> : vector<8x128xf32>
    %24 = vector.multi_reduction <add>, %23, %cst_9 [0] : vector<2x8x128xf32> to vector<8x128xf32>
    %c0_10 = arith.constant 0 : index
    %c0_11 = arith.constant 0 : index
    %c0_12 = arith.constant 0 : index
    %25 = vector.load %arg3[%c0_10, %c0_11, %c0_12] : memref<1x8x128xf32, #tpu.memory_space<vmem>>, vector<1x8x128xf32>
    %26 = vector.shape_cast %25 : vector<1x8x128xf32> to vector<8x128xf32>
    %27 = vector.shape_cast %24 : vector<8x128xf32> to vector<1x8x128xf32>
    tpu.vector_store %arg3[%c0_10, %c0_11, %c0_12], %27 {strides = array<i32>} : memref<1x8x128xf32, #tpu.memory_space<vmem>>, vector<1x8x128xf32>,
    %28 = arith.mulf %22, %1 : vector<16x128xf32>
    %29 = vector.shape_cast %28 : vector<16x128xf32> to vector<2x8x128xf32>
    %cst_13 = arith.constant dense<0.000000e+00> : vector<8x128xf32>
    %30 = vector.multi_reduction <add>, %29, %cst_13 [0] : vector<2x8x128xf32> to vector<8x128xf32>
    %c0_14 = arith.constant 0 : index
    %c0_15 = arith.constant 0 : index
    %c0_16 = arith.constant 0 : index
    %31 = vector.load %arg4[%c0_14, %c0_15, %c0_16] : memref<1x8x128xf32, #tpu.memory_space<vmem>>, vector<1x8x128xf32>
    %32 = vector.shape_cast %31 : vector<1x8x128xf32> to vector<8x128xf32>
    %33 = vector.shape_cast %30 : vector<8x128xf32> to vector<1x8x128xf32>
    tpu.vector_store %arg4[%c0_14, %c0_15, %c0_16], %33 {strides = array<i32>} : memref<1x8x128xf32, #tpu.memory_space<vmem>>, vector<1x8x128xf32>,
    %34 = arith.addf %22, %1 : vector<16x128xf32>
    %35 = vector.shape_cast %34 : vector<16x128xf32> to vector<2x8x128xf32>
    %cst_17 = arith.constant dense<0.000000e+00> : vector<8x128xf32>
    %36 = vector.multi_reduction <add>, %35, %cst_17 [0] : vector<2x8x128xf32> to vector<8x128xf32>
    %c0_18 = arith.constant 0 : index
    %c0_19 = arith.constant 0 : index
    %c0_20 = arith.constant 0 : index
    %37 = vector.load %arg5[%c0_18, %c0_19, %c0_20] : memref<1x8x128xf32, #tpu.memory_space<vmem>>, vector<1x8x128xf32>
    %38 = vector.shape_cast %37 : vector<1x8x128xf32> to vector<8x128xf32>
    %39 = vector.shape_cast %36 : vector<8x128xf32> to vector<1x8x128xf32>
    tpu.vector_store %arg5[%c0_18, %c0_19, %c0_20], %39 {strides = array<i32>} : memref<1x8x128xf32, #tpu.memory_space<vmem>>, vector<1x8x128xf32>,
    return
  }
  func.func @transform_0(%arg0: i32) -> (i32, i32) {
    %c0_i32 = arith.constant 0 : i32
    %c0_i32_0 = arith.constant 0 : i32
    return %arg0, %c0_i32 : i32, i32
  }
  func.func @transform_1(%arg0: i32) -> (i32, i32) {
    %c0_i32 = arith.constant 0 : i32
    %c0_i32_0 = arith.constant 0 : i32
    return %arg0, %c0_i32 : i32, i32
  }
  func.func @transform_2(%arg0: i32) -> (i32, i32, i32) {
    %c0_i32 = arith.constant 0 : i32
    %c0_i32_0 = arith.constant 0 : i32
    %c0_i32_1 = arith.constant 0 : i32
    return %arg0, %c0_i32, %c0_i32_0 : i32, i32, i32
  }
  func.func @transform_3(%arg0: i32) -> (i32, i32, i32) {
    %c0_i32 = arith.constant 0 : i32
    %c0_i32_0 = arith.constant 0 : i32
    %c0_i32_1 = arith.constant 0 : i32
    return %arg0, %c0_i32, %c0_i32_0 : i32, i32, i32
  }
  func.func @transform_4(%arg0: i32) -> (i32, i32, i32) {
    %c0_i32 = arith.constant 0 : i32
    %c0_i32_0 = arith.constant 0 : i32
    %c0_i32_1 = arith.constant 0 : i32
    return %arg0, %c0_i32, %c0_i32_0 : i32, i32, i32
  }
}

</mosaic_0001>

<bundles_post_ra>
// kernel: tpu_custom_call.1
= control target key start
LH: loop header
LB: loop body
LE: loop exit
PB: predicated region body
PF: predicated region fallthrough
CT: control target
= control target key end

     0   :  { %10 = vsyncpa [#allocation3], 0  ;;  %s438_s0 = inlined_call_operand.hbm [shape: f32[16,128], index: 0, kind: input, shape index: {}]   ;;  %s439_s1 = inlined_call_operand.hbm [shape: f32[16,128], index: 1, kind: input, shape index: {}]   ;;  %s440_s2 = inlined_call_operand.hbm [shape: f32[1,8,128], index: 2, kind: output, shape index: {0}]   ;;  %s441_s3 = inlined_call_operand.hbm [shape: f32[1,8,128], index: 3, kind: output, shape index: {1}]   ;;  %s442_s4 = inlined_call_operand.hbm [shape: f32[1,8,128], index: 4, kind: output, shape index: {2}]  }
   0x1   :  { %11 = vsyncpa [#allocation6], 0 }
   0x2   :  { %12 = vsyncpa [#allocation4], 0 }
   0x3   :  { %13 = vsyncpa [#allocation9], 0  ;;  %s18_s17 = sshll.u32 %s438_s0, 4  ;;  %s332_s18 = smov [#allocation2]   ;;  %s19_s17 = int_to_ptr.hbm [resolvable:$true] %s18_s17 }
   0x4   :  { %s20_s19 = sshll.u32 %s332_s18, 4  ;;  %s31_s22 = sshll.u32 %s439_s1, 4  ;;  %s21_s19 = int_to_ptr.vmem [resolvable:$true] %s20_s19  ;;  %s32_s22 = int_to_ptr.hbm [resolvable:$true] %s31_s22 }
   0x5   :  { %s333_s23 = smov 128   ;;  %s334_s24 = smov 8  }
   0x6   :  { %26 = dma.hbm_to_vmem [thread:$0]  %s19_s17, 256, %s21_s19, [#allocation3], %s333_s23, %s333_s23, %s334_s24  }
   0x7   :  { %s335_s25 = smov [#allocation5]  }
   0x8   :  { %s33_s26 = sshll.u32 %s335_s25, 4  ;;  %s34_s26 = int_to_ptr.vmem [resolvable:$true] %s33_s26 }
   0x9   :  { %39 = dma.hbm_to_vmem [thread:$0]  %s32_s22, 256, %s34_s26, [#allocation6], %s333_s23, %s333_s23, %s334_s24  }
   0xa   :  { %324 = dma.done.wait [#allocation3], 256  }
   0xb   :  { %325 = vsyncadd [#allocation3], 4294967040 }
   0xc   :  { %326 = dma.done.wait [#allocation6], 256  }
   0xd   :  { %327 = vsyncadd [#allocation6], 4294967040  ;;  %v370_v0 = vld [vmem:[#allocation2] sm:$0xff]  ;;  %v372_v1 = vld [vmem:[#allocation2 + $0x8] sm:$0xff]  ;;  %s336_s0 = smov [#allocation7]   ;;  %s143_s29 = sshll.u32 %s440_s2, 4  ;;  %s144_s29 = int_to_ptr.hbm [resolvable:$true] %s143_s29 }
   0xe   :  { %v52_v2 = vand.u32 2147483647, %v370_v0  ;;  %v53_v3 = vand.u32 2147483647, %v372_v1  ;;  %v378_v11 = vld [vmem:[#allocation5] sm:$0xff]  ;;  %v60_v15 = vsub.f32 0.0, %v370_v0 }
   0xf   :  { %v383_v16 = vld [vmem:[#allocation5 + $0x8] sm:$0xff]  ;;  %v61_v17 = vsub.f32 0.0, %v372_v1  ;;  %v84_v18 = vsub.f32 1.0, %v378_v11  ;;  %vm90_vm0 = vcmp.ge.f32.partialorder %v370_v0, 0.0  ;;  %vm91_vm7 = vcmp.ge.f32.partialorder %v372_v1, 0.0  ;;  %s141_s1 = sshll.u32 %s336_s0, 4  ;;  %s142_s1 = int_to_ptr.vmem [resolvable:$true] %s141_s1 }
  0x10   :  { %v54_v4 = vsub.f32 0.0, %v52_v2  ;;  %v55_v5 = vsub.f32 0.0, %v53_v3  ;;  %v62_v22 = vmax.f32 %v60_v15, 0.0  ;;  %v85_v24 = vsub.f32 1.0, %v383_v16  ;;  %s337_s30 = smov [#allocation8]   ;;  %s154_s7 = sshll.u32 %s441_s3, 4  ;;  %s155_s7 = int_to_ptr.hbm [resolvable:$true] %s154_s7 }
  0x11   :  { %v63_v27 = vmax.f32 %v61_v17, 0.0  ;;  %v86_v28 = vmul.f32 %v84_v18, %v370_v0  ;;  %s152_s2 = sshll.u32 %s337_s30, 4  ;;  %s338_s8 = smov [#allocation10]   ;;  %s153_s2 = int_to_ptr.vmem [resolvable:$true] %s152_s2 }
  0x12   :  { %v56_v6 = vmul.f32 1.442695, %v54_v4  ;;  %v58_v7 = vmul.f32 1.442695, %v55_v5  ;;  %v87_v47 = vmul.f32 %v85_v24, %v372_v1  ;;  %s163_s9 = sshll.u32 %s338_s8, 4  ;;  %s165_s12 = sshll.u32 %s442_s4, 4  ;;  %s164_s9 = int_to_ptr.vmem [resolvable:$true] %s163_s9  ;;  %s166_s12 = int_to_ptr.hbm [resolvable:$true] %s165_s12 }
  0x14   :  { %192 = vpow2.f32 %v56_v6 }
  0x15   :  { %194 = vpow2.f32 %v58_v7 }
  0x1a   :  { %v193_v8 = vpop.eup %192 }
  0x1b   :  { %v376_v9 = vpop.eup %194  ;;  %v64_v10 = vadd.f32 1.0, %v193_v8  ;;  %v67_v13 = vmul.f32 -0.5, %v193_v8  ;;  %v70_v20 = vand.u32 2147483647, %v193_v8  ;;  %v92_v57 = vsel %vm90_vm0, 1.0, %v193_v8 }
  0x1c   :  { %v73_v12 = vadd.f32 1.0, %v376_v9  ;;  %v76_v14 = vmul.f32 -0.5, %v376_v9  ;;  %v79_v23 = vand.u32 2147483647, %v376_v9  ;;  %v93_v60 = vsel %vm91_vm7, 1.0, %v376_v9 }
  0x1d   :  { %196 = vrcp.f32 %v64_v10  ;;  %v68_v19 = vadd.f32 1.0, %v67_v13  ;;  %vm101_vm1 = vweird.f32 %v64_v10  ;;  %v105_v26 = vand.u32 2147483647, %v64_v10 }
  0x1e   :  { %198 = vrcp.f32 %v73_v12  ;;  %v77_v21 = vadd.f32 1.0, %v76_v14  ;;  %v107_v31 = vand.u32 2147483648, %v64_v10  ;;  %vm116_vm2 = vweird.f32 %v73_v12 }
  0x1f   :  { %200 = vlog2.f32 %v64_v10  ;;  %v69_v32 = vmul.f32 %v193_v8, %v68_v19  ;;  %v122_v35 = vand.u32 2147483648, %v73_v12  ;;  %vm391_vm3 = vcmp.lt.f32.partialorder %v70_v20, 0.0004427343 }
  0x20   :  { %202 = vlog2.f32 %v73_v12  ;;  %v78_v37 = vmul.f32 %v376_v9, %v77_v21  ;;  %vm396_vm5 = vcmp.lt.f32.partialorder %v79_v23, 0.0004427343  ;;  %v120_v43 = vand.u32 2147483647, %v73_v12 }
  0x21   :  { %v108_v49 = vor.u32 1.1754944e-38, %v107_v31  ;;  %vm106_vm9 = vcmp.eq.f32.partialorder %v105_v26, 8.507059e+37  ;;  %v123_v55 = vor.u32 1.1754944e-38, %v122_v35 }
  0x22   :  { %vm121_vm11 = vcmp.eq.f32.partialorder %v120_v43, 8.507059e+37 }
  0x23   :  { %v197_v25 = vpop.eup %196 }
  0x24   :  { %v199_v29 = vpop.eup %198  ;;  %v97_v30 = vmul.f32 %v197_v25, %v64_v10  ;;  %vm102_vm4 = vweird.f32 %v197_v25 }
  0x25   :  { %v201_v33 = vpop.eup %200  ;;  %v112_v34 = vmul.f32 %v199_v29, %v73_v12  ;;  %vm117_vm6 = vweird.f32 %v199_v29  ;;  %vm405_vm8 = vmor %vm101_vm1, %vm102_vm4 }
  0x26   :  { %v203_v38 = vpop.eup %202  ;;  %v98_v39 = vsub.f32 1.0, %v97_v30  ;;  %v66_v40 = vmul.f32 0.6931472, %v201_v33  ;;  %vm412_vm10 = vmor %vm116_vm2, %vm117_vm6 }
  0x27   :  { %v113_v42 = vsub.f32 1.0, %v112_v34  ;;  %v75_v44 = vmul.f32 0.6931472, %v203_v38 }
  0x28   :  { %v99_v45 = vmul.f32 %v197_v25, %v98_v39  ;;  %v72_v46 = vsel %vm391_vm3, %v69_v32, %v66_v40 }
  0x29   :  { %v114_v50 = vmul.f32 %v199_v29, %v113_v42  ;;  %v81_v51 = vsel %vm396_vm5, %v78_v37, %v75_v44  ;;  %v82_v52 = vadd.f32 %v72_v46, %v62_v22 }
  0x2a   :  { %v100_v53 = vadd.f32 %v197_v25, %v99_v45  ;;  %v83_v56 = vadd.f32 %v81_v51, %v63_v27 }
  0x2b   :  { %v115_v58 = vadd.f32 %v199_v29, %v114_v50  ;;  %v88_v59 = vadd.f32 %v86_v28, %v82_v52 }
  0x2c   :  { %v104_v61 = vsel %vm405_vm8, %v197_v25, %v100_v53  ;;  %v89_v62 = vadd.f32 %v87_v47, %v83_v56 }
  0x2d   :  { %v109_v63 = vsel %vm106_vm9, %v108_v49, %v104_v61  ;;  %v119_v0 = vsel %vm412_vm10, %v199_v29, %v115_v58 }
  0x2e   :  { %v110_v2 = vmul.f32 %v109_v63, %v92_v57  ;;  %v124_v3 = vsel %vm121_vm11, %v123_v55, %v119_v0  ;;  %v126_v4 = vadd.f32 %v89_v62, %v88_v59 }
  0x2f   :  { %v125_v5 = vmul.f32 %v124_v3, %v93_v60 }
  0x30   :  { %v128_v1 = vmul.f32 %v110_v2, %v378_v11  ;;  %127 = vst [vmem:[#allocation7] sm:$0xff] %v126_v4  ;;  %v132_v6 = vadd.f32 %v110_v2, %v378_v11 }
  0x31   :  { %v129_v7 = vmul.f32 %v125_v5, %v383_v16  ;;  %v133_v8 = vadd.f32 %v125_v5, %v383_v16  ;;  %146 = dma.vmem_to_hbm [thread:$0]  %s142_s1, 128, %s144_s29, [#allocation4]  }
  0x33   :  { %v130_v9 = vadd.f32 %v129_v7, %v128_v1  ;;  %v134_v10 = vadd.f32 %v133_v8, %v132_v6 }
  0x35   :  { %131 = vst [vmem:[#allocation8] sm:$0xff] %v130_v9 }
  0x36   :  { %135 = vst [vmem:[#allocation10] sm:$0xff] %v134_v10  ;;  %157 = dma.vmem_to_hbm [thread:$0]  %s153_s2, 128, %s155_s7, [#allocation9]  }
  0x37   :  { %168 = dma.vmem_to_hbm [thread:$0]  %s164_s9, 128, %s166_s12, [#allocation9]  }
  0x38   :  { %328 = dma.done.wait [#allocation4], 128  }
  0x39   :  { %329 = vsyncadd [#allocation4], 4294967168 }
  0x3a   :  { %330 = dma.done.wait [#allocation9], 256  }
  0x3b   :  { %331 = vsyncadd [#allocation9], 4294967040 }
  0x3c   :  { %181 = vsyncpa [#allocation3], 1 }
  0x3d   :  { %182 = vsyncpa [#allocation6], 1 }
  0x3e   :  { %183 = vsyncpa [#allocation4], 1 }
  0x3f   :  { %184 = vsyncpa [#allocation9], 1 }

</bundles_post_ra>
